<compile_context>
chip_gen: v6e
topology: v6e:2x2x1
jax: 0.10.0
libtpu: 0.0.40
codegen_flags: <defaults>
</compile_context>

<pallas_src>
import math

import jax
import jax.numpy as jnp
from jax.experimental import pallas as pl
from jax.experimental.pallas import tpu as pltpu


def _round_up(x, m):
    return ((x + m - 1) // m) * m


def _cdiv(a, b):
    return (a + b - 1) // b


def _normalize(logits):
    """Center over the last dim, divide by max(L2 norm, 1e-10). All f32."""
    n = logits.shape[-1]
    mean = jnp.sum(logits, axis=-1, keepdims=True) * jnp.float32(1.0 / n)
    centered = logits - mean
    sumsq = jnp.sum(centered * centered, axis=-1, keepdims=True)
    # max(sqrt(ss), 1e-10) == sqrt(max(ss, 1e-20)); rsqrt runs on the EUP slot
    # and the divide becomes a VPU multiply.
    inv_norm = jax.lax.rsqrt(jnp.maximum(sumsq, jnp.float32(1e-20)))
    return centered * inv_norm


def _single_step_kernel(x_ref, w_ref, b_ref, o_ref):
    # x_ref: (tm, D)  w_ref: (D, N)  b_ref: (1, N)  o_ref: (tm, N) f32
    logits = jnp.dot(x_ref[...], w_ref[...], preferred_element_type=jnp.float32)
    logits = logits + b_ref[...]
    o_ref[...] = _normalize(logits).astype(o_ref.dtype)


def _k_tiled_kernel(x_ref, w_ref, b_ref, o_ref):
    # x_ref: (tm, tk)  w_ref: (tk, N)  b_ref: (1, N)
    # o_ref: (tm, N) f32, resident across the k axis (block index (i, 0) âˆ€ k).
    k = pl.program_id(1)

    @pl.when(k == 0)
    def _():
        # Initialise the resident output tile with the broadcast bias; partial
        # matmul sums then accumulate straight into o_ref (no VMEM scratch).
        o_ref[...] = jnp.broadcast_to(b_ref[...], o_ref.shape)

    o_ref[...] += jnp.dot(x_ref[...], w_ref[...],
                          preferred_element_type=jnp.float32)

    @pl.when(k == pl.num_programs(1) - 1)
    def _():
        o_ref[...] = _normalize(o_ref[...]).astype(o_ref.dtype)


def logit_normalization_forward(x_nchw, weight, bias, normalize_logits=True,
                                *, use_bf16=True, tm=None, tk=None):
    """Forward pass of LogitNormalizationWrapper(flatten + Linear(D, N)).

    x_nchw: (B, C, H, W) float32 (NCHW, like PyTorch)
    weight: (D, N) float32, D = C*H*W  (already transposed for x @ W)
    bias:   (N,)  float32
    """
    B = x_nchw.shape[0]
    D, N = weight.shape
    x2d = x_nchw.reshape(B, D)            # == torch x.flatten(1)

    if not normalize_logits:
        # TODO(synk): plain-logits path left in JAX (no reduction, nothing to fuse).
        return x2d @ weight + bias[None, :]

    in_dtype = jnp.bfloat16 if use_bf16 else jnp.float32
    in_bytes = jnp.dtype(in_dtype).itemsize

    # ---------- Generation-aware VMEM budget ----------
    try:
        phys_vmem = int(pltpu.get_tpu_info().vmem_capacity_bytes)
    except Exception:                      # conservative fallback (v7x per-TC)
        phys_vmem = 64 * 1024 * 1024
    budget = (phys_vmem * 3) // 4          # headroom for compiler scratch

    # ---------- Batch tiling ----------
    B_pad = _round_up(B, 8)                # sublane-aligned rows
    if tm is None:
        tm = min(512, B_pad)               # weight re-reads scale as 1/tm
        if B_pad >= 16 and B_pad // tm < 2:
            # Guarantee >= 2 batch tiles so the "parallel" axis can shard
            # across v7x's two TensorCores.  (B_pad == 8 cannot be split;
            # TODO(synk): a core_map split over K/N could use the 2nd core.)
            tm = _round_up(_cdiv(B_pad, 2), 8)
    tm = max(8, _round_up(min(tm, B_pad), 8))
    B_grid = _round_up(B_pad, tm)

    def _vmem_bytes(tm_, tk_):
        return (2 * tm_ * tk_ * in_bytes   # x tile (double-buffered)
                + 2 * tk_ * N * in_bytes   # weight tile (double-buffered)
                + 2 * N * 4                # bias
                + 2 * tm_ * N * 4)         # resident f32 output tile

    # ---------- Single-step (no K axis) vs K-tiled ----------
    single_step = (tk is None) and (_vmem_bytes(tm, D) <= budget)

    x_p = x2d.astype(in_dtype)
    # TODO(synk): in a real model, cast (and pad) W once at init, not per call.
    w_p = weight.astype(in_dtype)
    b_p = bias.reshape(1, N).astype(jnp.float32)

    if single_step:
        if B_grid != B:
            x_p = jnp.pad(x_p, ((0, B_grid - B), (0, 0)))
        grid = (B_grid // tm,)
        in_specs = [
            pl.BlockSpec((tm, D), lambda i: (i, 0)),   # x tile
            pl.BlockSpec((D, N), lambda i: (0, 0)),    # full weight (true N)
            pl.BlockSpec((1, N), lambda i: (0, 0)),    # bias
        ]
        out_specs = pl.BlockSpec((tm, N), lambda i: (i, 0))
        kernel = _single_step_kernel
        dim_sems = ("parallel",)
        need = _vmem_bytes(tm, D)
    else:
        if tk is None:
            # Largest lane-aligned (multiple-of-128) K tile under the budget.
            def _max_tk(tm_):
                avail = budget - 2 * N * 4 - 2 * tm_ * N * 4
                return (avail // (2 * in_bytes * (tm_ + N))) // 128 * 128

            tk = _max_tk(tm)
            while tk < 128 and tm > 8:     # very large N: shrink tm until fit
                tm = max(8, _round_up(tm // 2, 8))
                tk = _max_tk(tm)
            B_grid = _round_up(B_pad, tm)
        tk = max(128, min(_round_up(tk, 128), _round_up(D, 128)))
        D_pad = _round_up(D, tk)
        x_p = jnp.pad(x_p, ((0, B_grid - B), (0, D_pad - D)))
        if D_pad != D:
            w_p = jnp.pad(w_p, ((0, D_pad - D), (0, 0)))
        grid = (B_grid // tm, D_pad // tk)             # reduction axis LAST
        in_specs = [
            pl.BlockSpec((tm, tk), lambda i, k: (i, k)),   # x tile
            pl.BlockSpec((tk, N), lambda i, k: (k, 0)),    # weight tile (true N)
            pl.BlockSpec((1, N), lambda i, k: (0, 0)),     # bias
        ]
        out_specs = pl.BlockSpec((tm, N), lambda i, k: (i, 0))
        kernel = _k_tiled_kernel
        dim_sems = ("parallel", "arbitrary")
        need = _vmem_bytes(tm, tk)

    vmem_limit = int(max(min(0.85 * phys_vmem, 100 * 1024 * 1024),
                         need + 4 * 1024 * 1024))

    out = pl.pallas_call(
        kernel,
        out_shape=jax.ShapeDtypeStruct((B_grid, N), jnp.float32),
        grid=grid,
        in_specs=in_specs,
        out_specs=out_specs,
        compiler_params=pltpu.CompilerParams(
            dimension_semantics=dim_sems,
            vmem_limit_bytes=vmem_limit,
        ),
    )(x_p, w_p, b_p)

    # Padded batch rows contain normalized-bias garbage; strip them here and
    # never consume `out` directly.
    return out[:B]


def _reference(x_nchw, weight, bias):
    B = x_nchw.shape[0]
    logits = x_nchw.reshape(B, -1) @ weight + bias[None, :]
    logits = logits - logits.mean(axis=-1, keepdims=True)
    norms = jnp.maximum(jnp.linalg.norm(logits, axis=-1, keepdims=True), 1e-10)
    return logits / norms


if __name__ == "__main__":
    # Small shapes consistent with an image-classifier wrapped model.
    B, C, H, W = 2, 4, 16, 16
    D = C * H * W            # 1024
    N = 32                   # number of classes / logits

    key = jax.random.PRNGKey(0)
    kx, kw, kb = jax.random.split(key, 3)

    x = jax.random.normal(kx, (B, C, H, W), dtype=jnp.float32)

    # Deterministic PyTorch-Linear-style init: U(-1/sqrt(D), 1/sqrt(D)).
    bound = 1.0 / math.sqrt(D)
    weight = jax.random.uniform(kw, (D, N), jnp.float32, -bound, bound)
    bias = jax.random.uniform(kb, (N,), jnp.float32, -bound, bound)

    out = logit_normalization_forward(x, weight, bias, normalize_logits=True)
    out = jax.block_until_ready(out)
    assert out.shape == (B, N)

    # Exact-semantics check: the kernel quantizes x/W to bf16 before the MXU
    # (bf16 products are exact in f32, accumulation is f32), so compare
    # against a reference built from the same bf16-quantized inputs.
    xq = x.astype(jnp.bfloat16).astype(jnp.float32)
    wq = weight.astype(jnp.bfloat16).astype(jnp.float32)
    ref_q = _reference(xq, wq, bias)
    assert jnp.allclose(out, ref_q, atol=1e-5, rtol=1e-5), \
        "mismatch vs bf16-input reference"

    # Sanity check vs the pure-f32 reference (only bf16 input-quantization noise).
    ref_f32 = _reference(x, weight, bias)
    assert jnp.allclose(out, ref_f32, atol=2e-2, rtol=2e-2), \
        "mismatch vs f32 reference"

    print("KERNEL_OK")
</pallas_src>

<mosaic_0001>
module attributes {stable_mosaic.version = 11 : i64} {
  func.func @_single_step_kernel(%arg0: i32, %arg1: memref<8x1024xbf16, #tpu.memory_space<vmem>>, %arg2: memref<1024x32xbf16, #tpu.memory_space<vmem>>, %arg3: memref<1x32xf32, #tpu.memory_space<vmem>>, %arg4: memref<8x32xf32, #tpu.memory_space<vmem>>) attributes {dimension_semantics = [#tpu.dimension_semantics<parallel>], iteration_bounds = array<i64: 1>, scalar_prefetch = 0 : i64, scratch_operands = 0 : i64, tpu.core_type = #tpu.core_type<tc>, window_params = [{transform_indices = @transform_0, window_bounds = array<i64: 8, 1024>}, {pipeline_mode = #tpu.pipeline_mode<synchronous>, transform_indices = @transform_1, window_bounds = array<i64: 1024, 32>}, {pipeline_mode = #tpu.pipeline_mode<synchronous>, transform_indices = @transform_2, window_bounds = array<i64: 1, 32>}, {transform_indices = @transform_3, window_bounds = array<i64: 8, 32>}]} {
    %c0 = arith.constant 0 : index
    %c0_0 = arith.constant 0 : index
    %0 = vector.load %arg1[%c0, %c0_0] : memref<8x1024xbf16, #tpu.memory_space<vmem>>, vector<8x1024xbf16>
    %c0_1 = arith.constant 0 : index
    %c0_2 = arith.constant 0 : index
    %1 = vector.load %arg2[%c0_1, %c0_2] : memref<1024x32xbf16, #tpu.memory_space<vmem>>, vector<1024x32xbf16>
    %cst = arith.constant dense<0.000000e+00> : vector<8x32xf32>
    %2 = tpu.matmul %0, %1, %cst {dimension_numbers = #tpu.dot_dimension_numbers<[1], [0], [0], [1], [0, 0, 1, 1], [], []>} : vector<8x1024xbf16>, vector<1024x32xbf16>, vector<8x32xf32> -> vector<8x32xf32>
    %c0_3 = arith.constant 0 : index
    %c0_4 = arith.constant 0 : index
    %3 = vector.load %arg3[%c0_3, %c0_4] : memref<1x32xf32, #tpu.memory_space<vmem>>, vector<1x32xf32>
    %4 = vector.broadcast %3 : vector<1x32xf32> to vector<8x32xf32>
    %5 = arith.addf %2, %4 : vector<8x32xf32>
    %cst_5 = arith.constant dense<0.000000e+00> : vector<8xf32>
    %6 = vector.multi_reduction <add>, %5, %cst_5 [1] : vector<8x32xf32> to vector<8xf32>
    %7 = vector.shape_cast %6 : vector<8xf32> to vector<8x1xf32>
    %cst_6 = arith.constant 3.125000e-02 : f32
    %8 = vector.broadcast %cst_6 : f32 to vector<8x1xf32>
    %9 = arith.mulf %7, %8 : vector<8x1xf32>
    %10 = vector.broadcast %9 : vector<8x1xf32> to vector<8x32xf32>
    %11 = arith.subf %5, %10 : vector<8x32xf32>
    %12 = arith.mulf %11, %11 : vector<8x32xf32>
    %cst_7 = arith.constant dense<0.000000e+00> : vector<8xf32>
    %13 = vector.multi_reduction <add>, %12, %cst_7 [1] : vector<8x32xf32> to vector<8xf32>
    %14 = vector.shape_cast %13 : vector<8xf32> to vector<8x1xf32>
    %cst_8 = arith.constant 9.99999968E-21 : f32
    %15 = vector.broadcast %cst_8 : f32 to vector<8x1xf32>
    %16 = arith.maximumf %14, %15 : vector<8x1xf32>
    %17 = math.rsqrt %16 : vector<8x1xf32>
    %18 = vector.broadcast %17 : vector<8x1xf32> to vector<8x32xf32>
    %19 = arith.mulf %11, %18 : vector<8x32xf32>
    %c0_9 = arith.constant 0 : index
    %c0_10 = arith.constant 0 : index
    %20 = vector.load %arg4[%c0_9, %c0_10] : memref<8x32xf32, #tpu.memory_space<vmem>>, vector<8x32xf32>
    tpu.vector_store %arg4[%c0_9, %c0_10], %19 {strides = array<i32>} : memref<8x32xf32, #tpu.memory_space<vmem>>, vector<8x32xf32>,
    return
  }
  func.func @transform_0(%arg0: i32) -> (i32, i32) {
    %c0_i32 = arith.constant 0 : i32
    %c0_i32_0 = arith.constant 0 : i32
    return %arg0, %c0_i32 : i32, i32
  }
  func.func @transform_1(%arg0: i32) -> (i32, i32) {
    %c0_i32 = arith.constant 0 : i32
    %c0_i32_0 = arith.constant 0 : i32
    %c0_i32_1 = arith.constant 0 : i32
    return %c0_i32, %c0_i32_0 : i32, i32
  }
  func.func @transform_2(%arg0: i32) -> (i32, i32) {
    %c0_i32 = arith.constant 0 : i32
    %c0_i32_0 = arith.constant 0 : i32
    %c0_i32_1 = arith.constant 0 : i32
    return %c0_i32, %c0_i32_0 : i32, i32
  }
  func.func @transform_3(%arg0: i32) -> (i32, i32) {
    %c0_i32 = arith.constant 0 : i32
    %c0_i32_0 = arith.constant 0 : i32
    return %arg0, %c0_i32 : i32, i32
  }
}

</mosaic_0001>

<bundles_post_ra>
// kernel: tpu_custom_call.1
= control target key start
LH: loop header
LB: loop body
LE: loop exit
PB: predicated region body
PF: predicated region fallthrough
CT: control target
= control target key end

     0   :  { %s1247_s0 = inlined_call_operand.vmem [shape: bf16[8,1024], index: 0, kind: input, shape index: {}]   ;;  %s1248_s1 = inlined_call_operand.vmem [shape: bf16[1024,32], index: 1, kind: input, shape index: {}]   ;;  %s1249_s2 = inlined_call_operand.vmem [shape: f32[1,32], index: 2, kind: input, shape index: {}]   ;;  %s1250_s3 = inlined_call_operand.hbm [shape: f32[8,32], index: 3, kind: output, shape index: {}]  }
   0x1   :  { %v917_v0 = vld [vmem:[%s1248_s1 + $0x78] sm:$0xff]   ;;  %v921_v4 = vld [vmem:[%s1248_s1 + $0x70] sm:$0xff]   ;;  %v925_v8 = vld [vmem:[%s1248_s1 + $0x68] sm:$0xff]  }
   0x2   :  { %v918_v1 = vld [vmem:[%s1248_s1 + $0xf8] sm:$0xff]   ;;  %828 = vmatprep.subr.bf16.mxu0 %v917_v0  ;;  %v922_v5 = vld [vmem:[%s1248_s1 + $0xf0] sm:$0xff]   ;;  %v926_v9 = vld [vmem:[%s1248_s1 + $0xe8] sm:$0xff]  }
   0x3   :  { %v919_v2 = vld [vmem:[%s1248_s1 + $0x38] sm:$0xff]   ;;  %850 = vmatprep.subr.bf16.mxu1 %v918_v1  ;;  %v923_v6 = vld [vmem:[%s1248_s1 + $0x30] sm:$0xff]   ;;  %v927_v10 = vld [vmem:[%s1248_s1 + $0x28] sm:$0xff]  }
   0x4   :  { %v920_v3 = vld [vmem:[%s1248_s1 + $0xb8] sm:$0xff]   ;;  %829 = vmatpush3.bf16.msra.mxu0 %v919_v2  ;;  %v924_v7 = vld [vmem:[%s1248_s1 + $0xb0] sm:$0xff]   ;;  %v928_v11 = vld [vmem:[%s1248_s1 + $0xa8] sm:$0xff]  }
   0x5   :  { %851 = vmatpush3.bf16.msra.mxu1 %v920_v3  ;;  %830 = vmatprep.subr.bf16.mxu0 %v921_v4  ;;  %v929_v12 = vld [vmem:[%s1248_s1 + $0x60] sm:$0xff]   ;;  %v933_v16 = vld [vmem:[%s1248_s1 + $0x58] sm:$0xff]   ;;  %v937_v20 = vld [vmem:[%s1248_s1 + $0x50] sm:$0xff]  }
   0x6   :  { %852 = vmatprep.subr.bf16.mxu1 %v922_v5  ;;  %v930_v13 = vld [vmem:[%s1248_s1 + $0xe0] sm:$0xff]   ;;  %v934_v17 = vld [vmem:[%s1248_s1 + $0xd8] sm:$0xff]   ;;  %v938_v21 = vld [vmem:[%s1248_s1 + $0xd0] sm:$0xff]  }
   0x7   :  { %v931_v14 = vld [vmem:[%s1248_s1 + $0x20] sm:$0xff]   ;;  %v935_v18 = vld [vmem:[%s1248_s1 + $0x18] sm:$0xff]   ;;  %v939_v22 = vld [vmem:[%s1248_s1 + $0x10] sm:$0xff]  }
   0x8   :  { %831 = vmatpush3.bf16.msra.mxu0 %v923_v6  ;;  %v932_v15 = vld [vmem:[%s1248_s1 + $0xa0] sm:$0xff]   ;;  %v936_v19 = vld [vmem:[%s1248_s1 + $0x98] sm:$0xff]   ;;  %v940_v23 = vld [vmem:[%s1248_s1 + $0x90] sm:$0xff]  }
   0x9   :  { %853 = vmatpush3.bf16.msra.mxu1 %v924_v7  ;;  %832 = vmatprep.subr.bf16.mxu0 %v925_v8  ;;  %v941_v24 = vld [vmem:[%s1248_s1 + $0x48] sm:$0xff]   ;;  %v945_v28 = vld [vmem:[%s1248_s1 + $0x40] sm:$0xff]   ;;  %v953_v38 = vld [vmem:[%s1248_s1 + $0x178] sm:$0xff]  }
   0xa   :  { %854 = vmatprep.subr.bf16.mxu1 %v926_v9  ;;  %v942_v25 = vld [vmem:[%s1248_s1 + $0xc8] sm:$0xff]   ;;  %v946_v29 = vld [vmem:[%s1248_s1 + $0xc0] sm:$0xff]   ;;  %v954_v39 = vld [vmem:[%s1248_s1 + $0x1f8] sm:$0xff]  }
   0xb   :  { %v943_v26 = vld [vmem:[%s1248_s1 + $0x8] sm:$0xff]   ;;  %v947_v30 = vld [vmem:[%s1248_s1] sm:$0xff]   ;;  %v955_v40 = vld [vmem:[%s1248_s1 + $0x138] sm:$0xff]  }
   0xc   :  { %833 = vmatpush3.bf16.msra.mxu0 %v927_v10  ;;  %v944_v27 = vld [vmem:[%s1248_s1 + $0x88] sm:$0xff]   ;;  %v948_v31 = vld [vmem:[%s1248_s1 + $0x80] sm:$0xff]   ;;  %v956_v41 = vld [vmem:[%s1248_s1 + $0x1b8] sm:$0xff]  }
   0xd   :  { %855 = vmatpush3.bf16.msra.mxu1 %v928_v11  ;;  %834 = vmatprep.subr.bf16.mxu0 %v929_v12  ;;  %v16_v32 = vld [vmem:[%s1247_s0] sm:$0xff]  ;;  %v17_v33 = vld [vmem:[%s1247_s0 + $0x8] sm:$0xff]  ;;  %v957_v42 = vld [vmem:[%s1248_s1 + $0x170] sm:$0xff]  }
   0xe   :  { %856 = vmatprep.subr.bf16.mxu1 %v930_v13  ;;  %v756_v34 = vcombine.low %v16_v32, %v16_v32  ;;  %v757_v35 = vcombine.high %v16_v32, %v16_v32  ;;  %v758_v36 = vcombine.low %v17_v33, %v17_v33  ;;  %v759_v37 = vcombine.high %v17_v33, %v17_v33  ;;  %v958_v43 = vld [vmem:[%s1248_s1 + $0x1f0] sm:$0xff]   ;;  %v961_v46 = vld [vmem:[%s1248_s1 + $0x168] sm:$0xff]   ;;  %v965_v50 = vld [vmem:[%s1248_s1 + $0x160] sm:$0xff]  }
   0xf   :  { %v959_v44 = vld [vmem:[%s1248_s1 + $0x130] sm:$0xff]   ;;  %v962_v47 = vld [vmem:[%s1248_s1 + $0x1e8] sm:$0xff]   ;;  %v966_v51 = vld [vmem:[%s1248_s1 + $0x1e0] sm:$0xff]  }
  0x10   :  { %835 = vmatpush3.bf16.msra.mxu0 %v931_v14  ;;  %599 = vmatprep.mubr.bf16.mxu0 %v757_v35  ;;  %v960_v45 = vld [vmem:[%s1248_s1 + $0x1b0] sm:$0xff]   ;;  %v963_v48 = vld [vmem:[%s1248_s1 + $0x128] sm:$0xff]   ;;  %v967_v52 = vld [vmem:[%s1248_s1 + $0x120] sm:$0xff]  }
  0x11   :  { %857 = vmatpush3.bf16.msra.mxu1 %v932_v15  ;;  %836 = vmatprep.subr.bf16.mxu0 %v933_v16  ;;  %v964_v49 = vld [vmem:[%s1248_s1 + $0x1a8] sm:$0xff]   ;;  %v968_v53 = vld [vmem:[%s1248_s1 + $0x1a0] sm:$0xff]   ;;  %v969_v54 = vld [vmem:[%s1248_s1 + $0x158] sm:$0xff]  }
  0x12   :  { %858 = vmatprep.subr.bf16.mxu1 %v934_v17  ;;  %639 = vmatprep.mubr.bf16.mxu1 %v759_v37  ;;  %v970_v55 = vld [vmem:[%s1248_s1 + $0x1d8] sm:$0xff]   ;;  %v973_v58 = vld [vmem:[%s1248_s1 + $0x150] sm:$0xff]   ;;  %v977_v62 = vld [vmem:[%s1248_s1 + $0x148] sm:$0xff]  }
  0x13   :  { %v971_v56 = vld [vmem:[%s1248_s1 + $0x118] sm:$0xff]   ;;  %v974_v59 = vld [vmem:[%s1248_s1 + $0x1d0] sm:$0xff]   ;;  %v978_v63 = vld [vmem:[%s1248_s1 + $0x1c8] sm:$0xff]  }
  0x14   :  { %837 = vmatpush3.bf16.msra.mxu0 %v935_v18  ;;  %v972_v57 = vld [vmem:[%s1248_s1 + $0x198] sm:$0xff]   ;;  %v975_v60 = vld [vmem:[%s1248_s1 + $0x110] sm:$0xff]   ;;  %v979_v0 = vld [vmem:[%s1248_s1 + $0x108] sm:$0xff]  }
  0x15   :  { %859 = vmatpush3.bf16.msra.mxu1 %v936_v19  ;;  %838 = vmatprep.subr.bf16.mxu0 %v937_v20  ;;  %v976_v61 = vld [vmem:[%s1248_s1 + $0x190] sm:$0xff]   ;;  %v980_v1 = vld [vmem:[%s1248_s1 + $0x188] sm:$0xff]   ;;  %v981_v2 = vld [vmem:[%s1248_s1 + $0x140] sm:$0xff]  }
  0x16   :  { %860 = vmatprep.subr.bf16.mxu1 %v938_v21  ;;  %v982_v3 = vld [vmem:[%s1248_s1 + $0x1c0] sm:$0xff]   ;;  %v18_v6 = vld [vmem:[%s1247_s0 + $0x10] sm:$0xff]  ;;  %v19_v9 = vld [vmem:[%s1247_s0 + $0x18] sm:$0xff] }
  0x17   :  { %v983_v4 = vld [vmem:[%s1248_s1 + $0x100] sm:$0xff]   ;;  %v760_v7 = vcombine.low %v18_v6, %v18_v6  ;;  %v761_v8 = vcombine.high %v18_v6, %v18_v6 }
  0x18   :  { %839 = vmatpush3.bf16.msra.mxu0 %v939_v22  ;;  %v984_v5 = vld [vmem:[%s1248_s1 + $0x180] sm:$0xff]  }
  0x19   :  { %861 = vmatpush3.bf16.msra.mxu1 %v940_v23  ;;  %840 = vmatprep.subr.bf16.mxu0 %v941_v24 }
  0x1a   :  { %862 = vmatprep.subr.bf16.mxu1 %v942_v25 }
  0x1c   :  { %841 = vmatpush3.bf16.msra.mxu0 %v943_v26 }
  0x1d   :  { %863 = vmatpush3.bf16.msra.mxu1 %v944_v27  ;;  %842 = vmatprep.subr.bf16.mxu0 %v945_v28 }
  0x1e   :  { %864 = vmatprep.subr.bf16.mxu1 %v946_v29 }
  0x20   :  { %843 = vmatpush3.bf16.msra.mxu0 %v947_v30 }
  0x21   :  { %865 = vmatpush3.bf16.msra.mxu1 %v948_v31  ;;  %872 = vmatprep.subr.bf16.mxu0 %v953_v38 }
  0x22   :  { %894 = vmatprep.subr.bf16.mxu1 %v954_v39 }
  0x23   :  { %600 = vmatmul.mubr.bf16.vlgmr.msra.gmra.mxu0 %v756_v34 }
  0x24   :  { %640 = vmatmul.mubr.bf16.vlgmr.msra.gmra.mxu1 %v758_v36  ;;  %873 = vmatpush3.bf16.msra.mxu0 %v955_v40 }
  0x25   :  { %895 = vmatpush3.bf16.msra.mxu1 %v956_v41  ;;  %874 = vmatprep.subr.bf16.mxu0 %v957_v42 }
  0x26   :  { %896 = vmatprep.subr.bf16.mxu1 %v958_v43 }
  0x28   :  { %875 = vmatpush3.bf16.msra.mxu0 %v959_v44 }
  0x29   :  { %897 = vmatpush3.bf16.msra.mxu1 %v960_v45  ;;  %876 = vmatprep.subr.bf16.mxu0 %v961_v46 }
  0x2a   :  { %898 = vmatprep.subr.bf16.mxu1 %v962_v47 }
  0x2c   :  { %877 = vmatpush3.bf16.msra.mxu0 %v963_v48 }
  0x2d   :  { %899 = vmatpush3.bf16.msra.mxu1 %v964_v49  ;;  %878 = vmatprep.subr.bf16.mxu0 %v965_v50 }
  0x2e   :  { %900 = vmatprep.subr.bf16.mxu1 %v966_v51 }
  0x30   :  { %879 = vmatpush3.bf16.msra.mxu0 %v967_v52 }
  0x31   :  { %901 = vmatpush3.bf16.msra.mxu1 %v968_v53  ;;  %880 = vmatprep.subr.bf16.mxu0 %v969_v54 }
  0x32   :  { %902 = vmatprep.subr.bf16.mxu1 %v970_v55 }
  0x34   :  { %881 = vmatpush3.bf16.msra.mxu0 %v971_v56 }
  0x35   :  { %903 = vmatpush3.bf16.msra.mxu1 %v972_v57  ;;  %882 = vmatprep.subr.bf16.mxu0 %v973_v58 }
  0x36   :  { %904 = vmatprep.subr.bf16.mxu1 %v974_v59 }
  0x38   :  { %883 = vmatpush3.bf16.msra.mxu0 %v975_v60 }
  0x39   :  { %905 = vmatpush3.bf16.msra.mxu1 %v976_v61  ;;  %884 = vmatprep.subr.bf16.mxu0 %v977_v62 }
  0x3a   :  { %906 = vmatprep.subr.bf16.mxu1 %v978_v63 }
  0x3c   :  { %885 = vmatpush3.bf16.msra.mxu0 %v979_v0 }
  0x3d   :  { %907 = vmatpush3.bf16.msra.mxu1 %v980_v1  ;;  %886 = vmatprep.subr.bf16.mxu0 %v981_v2 }
  0x3e   :  { %908 = vmatprep.subr.bf16.mxu1 %v982_v3 }
  0x3f   :  { %8 = vsyncpa [#allocation3], 0  ;;  %v762_v10 = vcombine.low %v19_v9, %v19_v9  ;;  %v763_v11 = vcombine.high %v19_v9, %v19_v9  ;;  %679 = vmatprep.mubr.bf16.mxu0 %v761_v8  ;;  %v755_v21 = vld [vmem:[%s1249_s2] ss:$0 sm:$0xff]  ;;  %vm727_vm0 = vcmask 261120   ;;  %s1013_s2 = smov [#allocation2]  }
  0x40   :  { %887 = vmatpush3.bf16.msra.mxu0 %v983_v4  ;;  %s747_s13 = sshll.u32 %s1013_s2, 4  ;;  %s748_s13 = int_to_ptr.vmem [resolvable:$true] %s747_s13 }
  0x41   :  { %909 = vmatpush3.bf16.msra.mxu1 %v984_v5  ;;  %719 = vmatprep.mubr.bf16.mxu1 %v763_v11  ;;  %s991_s14 = scalar_lea.vmem %s748_s13, 128  ;;  %p996_p1 = scmp.lt.s32.totalorder %s748_s13, %s748_s13 }
  0x42   :  { %p992_p0 = scmp.ne.s32.totalorder %s748_s13, %s991_s14  ;;  %p997_p2 = scmp.lt.s32.totalorder %s991_s14, %s991_s14 }
  0x43   :  { %680 = vmatmul.mubr.bf16.vlgmr.msra.gmra.mxu0 %v760_v7 }
  0x44   :  { %720 = vmatmul.mubr.bf16.vlgmr.msra.gmra.mxu1 %v762_v10  ;;  %p998_p3 = por %p997_p2, %p996_p1 }
  0x46   :  { %p999_p4 = pnand %p998_p3, %p992_p0 }
  0xe3   :  { %v844_v12 = vpop.f32.mrf.mxu0 }
  0xe4   :  { %v866_v13 = vpop.f32.mrf.mxu1 }
  0xe5   :  { %v845_v14 = vpop.f32.mrf.mxu0 }
  0xe6   :  { %v867_v15 = vpop.f32.mrf.mxu1  ;;  %v846_v20 = vadd.f32 %v845_v14, %v844_v12 }
  0xe7   :  { %v847_v16 = vpop.f32.mrf.mxu0  ;;  %v868_v23 = vadd.f32 %v867_v15, %v866_v13 }
  0xe8   :  { %v869_v17 = vpop.f32.mrf.mxu1  ;;  %v602_v22 = vadd.f32 %v846_v20, %v755_v21 }
  0xe9   :  { %v848_v18 = vpop.f32.mrf.mxu0 }
  0xea   :  { %v870_v19 = vpop.f32.mrf.mxu1  ;;  %v642_v28 = vadd.f32 %v868_v23, %v602_v22 }
 0x103   :  { %v888_v24 = vpop.f32.mrf.mxu0 }
 0x104   :  { %v910_v25 = vpop.f32.mrf.mxu1 }
 0x105   :  { %v889_v26 = vpop.f32.mrf.mxu0 }
 0x106   :  { %v911_v27 = vpop.f32.mrf.mxu1  ;;  %v890_v29 = vadd.f32 %v889_v26, %v888_v24 }
 0x107   :  { %v891_v30 = vpop.f32.mrf.mxu0  ;;  %v912_v33 = vadd.f32 %v911_v27, %v910_v25 }
 0x108   :  { %v913_v31 = vpop.f32.mrf.mxu1  ;;  %v682_v32 = vadd.f32 %v890_v29, %v642_v28 }
 0x109   :  { %v892_v34 = vpop.f32.mrf.mxu0 }
 0x10a   :  { %v914_v35 = vpop.f32.mrf.mxu1  ;;  %v722_v36 = vadd.f32 %v912_v33, %v682_v32 }
 0x10c   :  { %v728_v37 = vsel %vm727_vm0, %v722_v36, 0.0 }
 0x10d   :  { %729 = vadd.xlane.f32.xlu0 %v728_v37 }
 0x196   :  { %v730_v38 = vpop.xlane.xlu0 %729 }
 0x197   :  { %v731_v39 = vmul.f32 0.03125, %v730_v38 }
 0x199   :  { %v732_v40 = vsub.f32 %v722_v36, %v731_v39 }
 0x19b   :  { %v733_v41 = vmul.f32 %v732_v40, %v732_v40 }
 0x19d   :  { %v734_v42 = vsel %vm727_vm0, %v733_v41, 0.0 }
 0x19e   :  { %735 = vadd.xlane.f32.xlu0 %v734_v42 }
 0x227   :  { %v736_v43 = vpop.xlane.xlu0 %735 }
 0x228   :  { %v737_v44 = vmax.f32 %v736_v43, 1e-20 }
 0x22a   :  { %989 = vrsqrt.f32 %v737_v44 }
 0x237   :  { %v990_v45 = vpop.eup %989 }
 0x238   :  { %v739_v46 = vmul.f32 %v990_v45, %v732_v40 }
 0x23a   :  { %740 = vst.msk [vmem:[#allocation2] sm:$0xff] %vm727_vm0, %v739_v46 }
 0x23b   :  { %1002 = shalt.err (!%p999_p4)
}
 0x23c   :  { %750 = dma.vmem_to_hbm [thread:$0]  %s748_s13, 128, %s1250_s3, [#allocation3]  }
 0x23d   :  { %1011 = dma.done.wait [#allocation3], 128  }
 0x23e   :  { %1012 = vsyncadd [#allocation3], 4294967168 }
 0x23f   :  { %754 = vsyncpa [#allocation3], 1 }

</bundles_post_ra>
